<compile_context>
chip_gen: v7x
topology: tpu7x:2x2x1
jax: 0.10.0
libtpu: 0.0.40
codegen_flags: <defaults>
</compile_context>

<pallas_src>
import math
import functools

import jax
import jax.numpy as jnp
from jax.experimental import pallas as pl
from jax.experimental.pallas import tpu as pltpu


_F_PAD = 128           # lane-dense feature width (all feature/hidden dims here are <= 128)
_BN_EPS = 1e-5
_MATMUL_DTYPE = jnp.bfloat16   # MXU operand dtype; accumulation is f32 via preferred_element_type

_VMEM_SPEC = pl.BlockSpec(memory_space=pltpu.MemorySpace.VMEM)


def _round_up(n, m):
    return ((n + m - 1) // m) * m


# ----------------------------- fused Pallas kernel -----------------------------

def make_fused_encoder_kernel(layer_has_shortcut):
    """Kernel running every ResidualBlock + the final L2 normalize in one pallas_call.

    refs: (x_ref, a_ref, w_ref, b_ref, out_ref)
      x_ref : [N_pad, 128]      zero-padded node features (f32)
      a_ref : [N_pad, N_pad]    normalized adjacency A_hat[target, source] (bf16, pre-cast)
      w_ref : [128, W_total]    packed bf16 weight slab; per layer one 128-wide block (BN-folded
                                conv weight) or 256-wide block (conv weight | shortcut weight)
      b_ref : [B_pad, 128]      packed f32 bias rows (BN-folded conv bias, then shortcut bias)
    Feature-column zero padding is invariant through every layer, so the final row norm over
    128 lanes equals the norm over the real feature columns.
    """
    layer_has_shortcut = tuple(bool(f) for f in layer_has_shortcut)

    def kernel(x_ref, a_ref, w_ref, b_ref, out_ref):
        x = x_ref[...]                     # [N_pad, 128] f32
        a = a_ref[...]                     # [N_pad, N_pad] bf16

        w_off = 0
        b_row = 0
        for has_sc in layer_has_shortcut:
            width = 2 * _F_PAD if has_sc else _F_PAD
            w = w_ref[:, w_off:w_off + width]               # bf16, 128-aligned static lane slice
            w_off += width

            xm = x.astype(_MATMUL_DTYPE)
            xw_full = jnp.dot(xm, w, preferred_element_type=jnp.float32)   # [N_pad, width] f32

            bc = b_ref[b_row:b_row + 1, :]                  # [1, 128] f32
            b_row += 1

            xw = xw_full[:, :_F_PAD]                        # conv half (tile-aligned split)
            h = jnp.dot(a, xw.astype(_MATMUL_DTYPE),
                        preferred_element_type=jnp.float32) + bc           # [N_pad, 128] f32
            h = jnp.maximum(h, 0.1 * h)                     # LeakyReLU(0.1); BN already folded
            # dropout: identity in eval mode

            if has_sc:                                      # real Linear shortcut (Fin != Fout)
                bs = b_ref[b_row:b_row + 1, :]
                b_row += 1
                res = xw_full[:, _F_PAD:] + bs
            else:                                           # nn.Identity shortcut: no matmul
                res = x

            y = h + res
            x = jnp.maximum(y, 0.1 * y)                     # LeakyReLU(0.1)

        # F.normalize(x, p=2, dim=1): rsqrt (EUP) instead of sqrt+divide, all in f32.
        sumsq = jnp.sum(x * x, axis=1, keepdims=True)
        inv = jax.lax.rsqrt(jnp.maximum(sumsq, 1e-24))      # == 1 / max(||x||_2, 1e-12)
        out_ref[...] = x * inv

    return kernel


# ----------------------------- wrapper -----------------------------

@functools.partial(jax.jit, static_argnames=("layer_flags", "out_dim"))
def encoder_forward(x, a_pad, w_slab, b_slab, layer_flags, out_dim):
    """x: [N, F_in] f32.  a_pad: [N_pad, N_pad] bf16 (pre-padded).  w_slab/b_slab: packed params."""
    n, f_in = x.shape
    n_pad = a_pad.shape[0]
    x_pad = jnp.zeros((n_pad, _F_PAD), jnp.float32).at[:n, :f_in].set(x)

    kernel = make_fused_encoder_kernel(layer_flags)
    out_pad = pl.pallas_call(
        kernel,
        out_shape=jax.ShapeDtypeStruct((n_pad, _F_PAD), jnp.float32),
        in_specs=[_VMEM_SPEC, _VMEM_SPEC, _VMEM_SPEC, _VMEM_SPEC],
        out_specs=_VMEM_SPEC,
    )(x_pad, a_pad, w_slab, b_slab)
    return out_pad[:n, :out_dim]


# ----------------------------- graph preprocessing (JAX glue, done once) -----------------------------

def build_gcn_adjacency(edge_index, num_nodes):
    """Replicates ResidualBlock's manual norm + GCNConv(normalize=True) re-norm as a dense
    [N, N] matrix with A_hat[target, source] = final edge weight.  Assumes no pre-existing
    self loops / duplicate edges in edge_index (true for the test graph)."""
    row, col = edge_index[0], edge_index[1]
    loop = jnp.arange(num_nodes, dtype=edge_index.dtype)
    row1 = jnp.concatenate([row, loop])
    col1 = jnp.concatenate([col, loop])

    # utils.degree(edge_index[0]) after add_self_loops
    deg1 = jnp.zeros((num_nodes,), jnp.float32).at[row1].add(1.0)
    dis1 = jnp.where(deg1 > 0, jax.lax.rsqrt(deg1), 0.0)
    w1 = dis1[row1] * dis1[col1]

    # gcn_norm inside GCNConv (self loops already present, so improved fill never applies)
    deg2 = jnp.zeros((num_nodes,), jnp.float32).at[col1].add(w1)
    dis2 = jnp.where(deg2 > 0, jax.lax.rsqrt(deg2), 0.0)
    w2 = dis2[row1] * w1 * dis2[col1]

    return jnp.zeros((num_nodes, num_nodes), jnp.float32).at[col1, row1].add(w2)


def pad_adjacency(a_hat):
    """Zero-pad A_hat to a 16-aligned N and pre-cast to the MXU operand dtype (hoisted out of
    the per-call wrapper)."""
    n = a_hat.shape[0]
    n_pad = _round_up(n, 16)
    a_pad = jnp.zeros((n_pad, n_pad), jnp.float32).at[:n, :n].set(a_hat)
    return a_pad.astype(_MATMUL_DTYPE)


# ----------------------------- parameters -----------------------------

def _xavier_uniform(key, out_dim, in_dim, gain):
    a = gain * math.sqrt(6.0 / (in_dim + out_dim))
    return jax.random.uniform(key, (out_dim, in_dim), jnp.float32, minval=-a, maxval=a)


def init_encoder_params(key, num_features, hidden_dims, negative_slope=0.1):
    """Raw (PyTorch-equivalent) parameters for the stack of ResidualBlocks."""
    dims = [num_features] + list(hidden_dims)
    gain_lrelu = math.sqrt(2.0 / (1.0 + negative_slope ** 2))  # calculate_gain('leaky_relu', 0.1)
    params = []
    for i in range(len(dims) - 1):
        fin, fout = dims[i], dims[i + 1]
        key, k_conv, k_sc = jax.random.split(key, 3)
        wc = _xavier_uniform(k_conv, fout, fin, gain_lrelu)          # GCNConv.lin.weight [out, in]
        blk = dict(
            wc_t=wc.T,                                               # [Fin, Fout]
            bc=jnp.zeros((fout,), jnp.float32),                      # GCNConv.bias
            gamma=jnp.ones((fout,), jnp.float32),                    # bn.weight
            beta=jnp.zeros((fout,), jnp.float32),                    # bn.bias
            rmean=jnp.zeros((fout,), jnp.float32),                   # running_mean
            rvar=jnp.ones((fout,), jnp.float32),                     # running_var
            has_shortcut=(fin != fout),
        )
        if fin != fout:
            ws = _xavier_uniform(k_sc, fout, fin, 1.0)               # shortcut Linear weight
            blk["ws_t"] = ws.T
            blk["bs"] = jnp.zeros((fout,), jnp.float32)
        params.append(blk)
    return params


def fold_and_pad_params(raw_params, f_pad=_F_PAD, eps=_BN_EPS):
    """Fold BatchNorm (eval) into the conv weight/bias, zero-pad to 128 lanes, and pack everything
    into ONE bf16 weight slab [128, W_total] (conv|shortcut concatenated per layer) and ONE f32
    bias slab [B_pad, 128]."""
    w_blocks, b_rows, flags = [], [], []
    for p in raw_params:
        fin, fout = p["wc_t"].shape
        s = p["gamma"] * jax.lax.rsqrt(p["rvar"] + eps)              # per-output-column BN scale
        wc = p["wc_t"] * s[None, :]
        bc = (p["bc"] - p["rmean"]) * s + p["beta"]

        wc_pad = jnp.zeros((f_pad, f_pad), jnp.float32).at[:fin, :fout].set(wc)
        b_rows.append(jnp.zeros((1, f_pad), jnp.float32).at[0, :fout].set(bc))
        if p["has_shortcut"]:
            ws_pad = jnp.zeros((f_pad, f_pad), jnp.float32).at[:fin, :fout].set(p["ws_t"])
            w_blocks.append(jnp.concatenate([wc_pad, ws_pad], axis=1))        # [128, 256]
            b_rows.append(jnp.zeros((1, f_pad), jnp.float32).at[0, :fout].set(p["bs"]))
        else:
            w_blocks.append(wc_pad)                                           # [128, 128]
        flags.append(p["has_shortcut"])

    w_slab = jnp.concatenate(w_blocks, axis=1).astype(_MATMUL_DTYPE)          # [128, W_total] bf16
    b_cat = jnp.concatenate(b_rows, axis=0)                                   # [B_total, 128] f32
    b_pad_rows = _round_up(b_cat.shape[0], 8)
    b_slab = jnp.zeros((b_pad_rows, f_pad), jnp.float32).at[:b_cat.shape[0], :].set(b_cat)
    return w_slab, b_slab, tuple(flags)


# ----------------------------- pure-JAX f32 reference (for correctness check) -----------------------------

def encoder_reference(x, a_hat, raw_params):
    for p in raw_params:
        res = x @ p["ws_t"] + p["bs"] if p["has_shortcut"] else x
        h = a_hat @ (x @ p["wc_t"]) + p["bc"]
        h = (h - p["rmean"]) * jax.lax.rsqrt(p["rvar"] + _BN_EPS) * p["gamma"] + p["beta"]
        h = jnp.where(h >= 0, h, 0.1 * h)
        y = h + res
        x = jnp.where(y >= 0, y, 0.1 * y)
    norm = jnp.sqrt(jnp.sum(x * x, axis=1, keepdims=True))
    return x / jnp.maximum(norm, 1e-12)


# ----------------------------- demo / test -----------------------------

if __name__ == "__main__":
    num_nodes = 16
    num_features = 8
    hidden_dims = [32, 32, 16]        # middle layer has Identity shortcut -> exercises both branches

    key = jax.random.PRNGKey(0)
    key, k_x = jax.random.split(key)
    x = jax.random.normal(k_x, (num_nodes, num_features), jnp.float32)

    # deterministic ring graph, both directions (no self loops)
    src = jnp.arange(num_nodes, dtype=jnp.int32)
    dst = (src + 1) % num_nodes
    edge_index = jnp.stack([jnp.concatenate([src, dst]),
                            jnp.concatenate([dst, src])], axis=0)     # [2, 32]

    raw_params = init_encoder_params(key, num_features, hidden_dims)
    w_slab, b_slab, layer_flags = fold_and_pad_params(raw_params)      # packed once (hoisted)
    a_hat = build_gcn_adjacency(edge_index, num_nodes)
    a_pad = pad_adjacency(a_hat)                                       # padded + bf16 once (hoisted)

    out = encoder_forward(x, a_pad, w_slab, b_slab, layer_flags, hidden_dims[-1])
    out = jax.block_until_ready(out)

    assert out.shape == (num_nodes, hidden_dims[-1])
    assert bool(jnp.all(jnp.isfinite(out)))
    # rows must be unit-norm after F.normalize (normalize runs in f32 inside the kernel)
    assert bool(jnp.allclose(jnp.linalg.norm(out, axis=1), 1.0, atol=1e-4))
    # fused + BN-folded + bf16-MXU kernel vs. unfused pure-JAX f32 reference (bf16 operand rounding
    # costs ~3 decimal digits even with f32 accumulation -> loosened tolerance per review)
    ref = encoder_reference(x, a_hat, raw_params)
    assert bool(jnp.allclose(out, ref, atol=5e-2, rtol=5e-2))
    print("KERNEL_OK")
</pallas_src>

<mosaic_0001>
module attributes {stable_mosaic.version = 11 : i64} {
  func.func @kernel(%arg0: memref<16x128xf32, #tpu.memory_space<vmem>>, %arg1: memref<16x16xbf16, #tpu.memory_space<vmem>>, %arg2: memref<128x640xbf16, #tpu.memory_space<vmem>>, %arg3: memref<8x128xf32, #tpu.memory_space<vmem>>, %arg4: memref<16x128xf32, #tpu.memory_space<vmem>>) attributes {dimension_semantics = [], scalar_prefetch = 0 : i64, scratch_operands = 0 : i64, tpu.core_type = #tpu.core_type<tc>} {
    %c0 = arith.constant 0 : index
    %c0_0 = arith.constant 0 : index
    %0 = vector.load %arg0[%c0, %c0_0] : memref<16x128xf32, #tpu.memory_space<vmem>>, vector<16x128xf32>
    %c0_1 = arith.constant 0 : index
    %c0_2 = arith.constant 0 : index
    %1 = vector.load %arg1[%c0_1, %c0_2] : memref<16x16xbf16, #tpu.memory_space<vmem>>, vector<16x16xbf16>
    %c0_3 = arith.constant 0 : index
    %c0_4 = arith.constant 0 : index
    %2 = vector.load %arg2[%c0_3, %c0_4] : memref<128x640xbf16, #tpu.memory_space<vmem>>, vector<128x256xbf16>
    %3 = arith.truncf %0 : vector<16x128xf32> to vector<16x128xbf16>
    %cst = arith.constant dense<0.000000e+00> : vector<16x256xf32>
    %4 = tpu.matmul %3, %2, %cst {dimension_numbers = #tpu.dot_dimension_numbers<[1], [0], [0], [1], [0, 0, 1, 1], [], []>} : vector<16x128xbf16>, vector<128x256xbf16>, vector<16x256xf32> -> vector<16x256xf32>
    %c0_5 = arith.constant 0 : index
    %c0_6 = arith.constant 0 : index
    %5 = vector.load %arg3[%c0_5, %c0_6] : memref<8x128xf32, #tpu.memory_space<vmem>>, vector<1x128xf32>
    %6 = vector.extract_strided_slice %4 {offsets = [0, 0], sizes = [16, 128], strides = [1, 1]} : vector<16x256xf32> to vector<16x128xf32>
    %7 = arith.truncf %6 : vector<16x128xf32> to vector<16x128xbf16>
    %cst_7 = arith.constant dense<0.000000e+00> : vector<16x128xf32>
    %8 = tpu.matmul %1, %7, %cst_7 {dimension_numbers = #tpu.dot_dimension_numbers<[1], [0], [0], [1], [0, 0, 1, 1], [], []>} : vector<16x16xbf16>, vector<16x128xbf16>, vector<16x128xf32> -> vector<16x128xf32>
    %9 = vector.broadcast %5 : vector<1x128xf32> to vector<16x128xf32>
    %10 = arith.addf %8, %9 : vector<16x128xf32>
    %cst_8 = arith.constant 1.000000e-01 : f32
    %11 = vector.broadcast %cst_8 : f32 to vector<16x128xf32>
    %12 = arith.mulf %11, %10 : vector<16x128xf32>
    %13 = arith.maximumf %10, %12 : vector<16x128xf32>
    %c1 = arith.constant 1 : index
    %c0_9 = arith.constant 0 : index
    %14 = vector.load %arg3[%c1, %c0_9] : memref<8x128xf32, #tpu.memory_space<vmem>>, vector<1x128xf32>
    %15 = vector.extract_strided_slice %4 {offsets = [0, 128], sizes = [16, 128], strides = [1, 1]} : vector<16x256xf32> to vector<16x128xf32>
    %16 = vector.broadcast %14 : vector<1x128xf32> to vector<16x128xf32>
    %17 = arith.addf %15, %16 : vector<16x128xf32>
    %18 = arith.addf %13, %17 : vector<16x128xf32>
    %cst_10 = arith.constant 1.000000e-01 : f32
    %19 = vector.broadcast %cst_10 : f32 to vector<16x128xf32>
    %20 = arith.mulf %19, %18 : vector<16x128xf32>
    %21 = arith.maximumf %18, %20 : vector<16x128xf32>
    %c0_11 = arith.constant 0 : index
    %c256 = arith.constant 256 : index
    %22 = vector.load %arg2[%c0_11, %c256] : memref<128x640xbf16, #tpu.memory_space<vmem>>, vector<128x128xbf16>
    %23 = arith.truncf %21 : vector<16x128xf32> to vector<16x128xbf16>
    %cst_12 = arith.constant dense<0.000000e+00> : vector<16x128xf32>
    %24 = tpu.matmul %23, %22, %cst_12 {dimension_numbers = #tpu.dot_dimension_numbers<[1], [0], [0], [1], [0, 0, 1, 1], [], []>} : vector<16x128xbf16>, vector<128x128xbf16>, vector<16x128xf32> -> vector<16x128xf32>
    %c2 = arith.constant 2 : index
    %c0_13 = arith.constant 0 : index
    %25 = vector.load %arg3[%c2, %c0_13] : memref<8x128xf32, #tpu.memory_space<vmem>>, vector<1x128xf32>
    %26 = arith.truncf %24 : vector<16x128xf32> to vector<16x128xbf16>
    %cst_14 = arith.constant dense<0.000000e+00> : vector<16x128xf32>
    %27 = tpu.matmul %1, %26, %cst_14 {dimension_numbers = #tpu.dot_dimension_numbers<[1], [0], [0], [1], [0, 0, 1, 1], [], []>} : vector<16x16xbf16>, vector<16x128xbf16>, vector<16x128xf32> -> vector<16x128xf32>
    %28 = vector.broadcast %25 : vector<1x128xf32> to vector<16x128xf32>
    %29 = arith.addf %27, %28 : vector<16x128xf32>
    %cst_15 = arith.constant 1.000000e-01 : f32
    %30 = vector.broadcast %cst_15 : f32 to vector<16x128xf32>
    %31 = arith.mulf %30, %29 : vector<16x128xf32>
    %32 = arith.maximumf %29, %31 : vector<16x128xf32>
    %33 = arith.addf %32, %21 : vector<16x128xf32>
    %cst_16 = arith.constant 1.000000e-01 : f32
    %34 = vector.broadcast %cst_16 : f32 to vector<16x128xf32>
    %35 = arith.mulf %34, %33 : vector<16x128xf32>
    %36 = arith.maximumf %33, %35 : vector<16x128xf32>
    %c0_17 = arith.constant 0 : index
    %c384 = arith.constant 384 : index
    %37 = vector.load %arg2[%c0_17, %c384] : memref<128x640xbf16, #tpu.memory_space<vmem>>, vector<128x256xbf16>
    %38 = arith.truncf %36 : vector<16x128xf32> to vector<16x128xbf16>
    %cst_18 = arith.constant dense<0.000000e+00> : vector<16x256xf32>
    %39 = tpu.matmul %38, %37, %cst_18 {dimension_numbers = #tpu.dot_dimension_numbers<[1], [0], [0], [1], [0, 0, 1, 1], [], []>} : vector<16x128xbf16>, vector<128x256xbf16>, vector<16x256xf32> -> vector<16x256xf32>
    %c3 = arith.constant 3 : index
    %c0_19 = arith.constant 0 : index
    %40 = vector.load %arg3[%c3, %c0_19] : memref<8x128xf32, #tpu.memory_space<vmem>>, vector<1x128xf32>
    %41 = vector.extract_strided_slice %39 {offsets = [0, 0], sizes = [16, 128], strides = [1, 1]} : vector<16x256xf32> to vector<16x128xf32>
    %42 = arith.truncf %41 : vector<16x128xf32> to vector<16x128xbf16>
    %cst_20 = arith.constant dense<0.000000e+00> : vector<16x128xf32>
    %43 = tpu.matmul %1, %42, %cst_20 {dimension_numbers = #tpu.dot_dimension_numbers<[1], [0], [0], [1], [0, 0, 1, 1], [], []>} : vector<16x16xbf16>, vector<16x128xbf16>, vector<16x128xf32> -> vector<16x128xf32>
    %44 = vector.broadcast %40 : vector<1x128xf32> to vector<16x128xf32>
    %45 = arith.addf %43, %44 : vector<16x128xf32>
    %cst_21 = arith.constant 1.000000e-01 : f32
    %46 = vector.broadcast %cst_21 : f32 to vector<16x128xf32>
    %47 = arith.mulf %46, %45 : vector<16x128xf32>
    %48 = arith.maximumf %45, %47 : vector<16x128xf32>
    %c4 = arith.constant 4 : index
    %c0_22 = arith.constant 0 : index
    %49 = vector.load %arg3[%c4, %c0_22] : memref<8x128xf32, #tpu.memory_space<vmem>>, vector<1x128xf32>
    %50 = vector.extract_strided_slice %39 {offsets = [0, 128], sizes = [16, 128], strides = [1, 1]} : vector<16x256xf32> to vector<16x128xf32>
    %51 = vector.broadcast %49 : vector<1x128xf32> to vector<16x128xf32>
    %52 = arith.addf %50, %51 : vector<16x128xf32>
    %53 = arith.addf %48, %52 : vector<16x128xf32>
    %cst_23 = arith.constant 1.000000e-01 : f32
    %54 = vector.broadcast %cst_23 : f32 to vector<16x128xf32>
    %55 = arith.mulf %54, %53 : vector<16x128xf32>
    %56 = arith.maximumf %53, %55 : vector<16x128xf32>
    %57 = arith.mulf %56, %56 : vector<16x128xf32>
    %cst_24 = arith.constant dense<0.000000e+00> : vector<16xf32>
    %58 = vector.multi_reduction <add>, %57, %cst_24 [1] : vector<16x128xf32> to vector<16xf32>
    %59 = vector.shape_cast %58 : vector<16xf32> to vector<16x1xf32>
    %cst_25 = arith.constant 1.000000e-24 : f32
    %60 = vector.broadcast %cst_25 : f32 to vector<16x1xf32>
    %61 = arith.maximumf %59, %60 : vector<16x1xf32>
    %62 = math.rsqrt %61 : vector<16x1xf32>
    %63 = vector.broadcast %62 : vector<16x1xf32> to vector<16x128xf32>
    %64 = arith.mulf %56, %63 : vector<16x128xf32>
    %c0_26 = arith.constant 0 : index
    %c0_27 = arith.constant 0 : index
    %65 = vector.load %arg4[%c0_26, %c0_27] : memref<16x128xf32, #tpu.memory_space<vmem>>, vector<16x128xf32>
    tpu.vector_store %arg4[%c0_26, %c0_27], %64 {strides = array<i32>} : memref<16x128xf32, #tpu.memory_space<vmem>>, vector<16x128xf32>,
    return
  }
}

</mosaic_0001>

<bundles_post_ra>
// kernel: encoder_forward.1
= control target key start
LH: loop header
LB: loop body
LE: loop exit
PB: predicated region body
PF: predicated region fallthrough
CT: control target
= control target key end

     0   :  { %9 = vsyncpa [#allocation3], 0  ;;  %s979_s0 = inlined_call_operand.vmem [shape: f32[16,128], index: 0, kind: input, shape index: {}]   ;;  %s980_s1 = inlined_call_operand.vmem [shape: bf16[16,16], index: 1, kind: input, shape index: {}]   ;;  %s981_s2 = inlined_call_operand.hbm [shape: bf16[128,640], index: 2, kind: input, shape index: {}]   ;;  %s982_s3 = inlined_call_operand.vmem [shape: f32[8,128], index: 3, kind: input, shape index: {}]   ;;  %s983_s4 = inlined_call_operand.hbm [shape: f32[16,128], index: 4, kind: output, shape index: {}]  }
   0x1   :  { %10 = vsyncpa [#allocation4], 0  ;;  %s868_s15 = smov [#allocation2]   ;;  %s820_s19 = scalar_lea.hbm %s981_s2, 5120 }
   0x2   :  { %s20_s16 = sshll.u32 %s868_s15, 4  ;;  %p821_p0 = scmp.ne.s32.totalorder %s981_s2, %s820_s19  ;;  %s21_s16 = int_to_ptr.vmem [resolvable:$true] %s20_s16 }
   0x3   :  { %p824_p1 = scmp.lt.u32.totalorder %s820_s19, %s981_s2 }
   0x5   :  { %p826_p2 = pnand %p824_p1, %p821_p0 }
   0x7   :  { %829 = shalt.err (!%p826_p2)
}
   0x8   :  { %s830_s24 = scalar_lea.vmem %s21_s16, 5120  ;;  %p835_p4 = scmp.lt.s32.totalorder %s21_s16, %s21_s16 }
   0x9   :  { %p831_p3 = scmp.ne.s32.totalorder %s21_s16, %s830_s24  ;;  %p836_p5 = scmp.lt.s32.totalorder %s830_s24, %s830_s24 }
   0xb   :  { %p837_p6 = por %p836_p5, %p835_p4 }
   0xd   :  { %p838_p7 = pnand %p837_p6, %p831_p3 }
   0xf   :  { %841 = shalt.err (!%p838_p7)
}
  0x10   :  { %s869_s25 = smov 320   ;;  %s870_s26 = smov 20  }
  0x11   :  { %26 = dma.hbm_to_vmem [thread:$0]  %s981_s2, 5120, %s21_s16, [#allocation3], %s869_s25, %s869_s25, %s870_s26  }
  0x12   :  { %864 = dma.done.wait [#allocation3], 5120  }
  0x13   :  { %865 = vsyncadd [#allocation3], 4294962176  ;;  %v871_v0 = vmov 0   ;;  %v759_v1 = vld [vmem:[#allocation2 + $0x4] ss:$20 sps:$4 sm:$0xff]   ;;  %v34_v18 = vld [vmem:[%s979_s0 + $0x8] sm:$0xff] }
  0x14   :  { %166 = vmatprep.mubr.bf16.mxu0 %v871_v0  ;;  %v761_v2 = vld [vmem:[#allocation2] ss:$20 sps:$4 sm:$0xff]   ;;  %134 = vmatprep.subr.bf16.mxu0 %v759_v1  ;;  %v764_v4 = vld [vmem:[#allocation2 + $0x28] ss:$20 sps:$4 sm:$0xff]   ;;  %v767_v6 = vld [vmem:[#allocation2 + $0x50] ss:$20 sps:$4 sm:$0xff]  }
  0x15   :  { %v762_v3 = vld [vmem:[#allocation2 + $0x2c] ss:$20 sps:$4 sm:$0xff]   ;;  %135 = vmatpush1.bf16.msra.mxu0 %v761_v2  ;;  %v765_v5 = vld [vmem:[#allocation2 + $0x54] ss:$20 sps:$4 sm:$0xff]   ;;  %v768_v7 = vld [vmem:[#allocation2 + $0x7c] ss:$20 sps:$4 sm:$0xff]  }
  0x16   :  { %136 = vmatprep.subr.bf16.mxu0 %v762_v3  ;;  %v770_v8 = vld [vmem:[#allocation2 + $0x78] ss:$20 sps:$4 sm:$0xff]   ;;  %v773_v10 = vld [vmem:[#allocation2 + $0xa0] ss:$20 sps:$4 sm:$0xff]   ;;  %v776_v12 = vld [vmem:[#allocation2 + $0xc8] ss:$20 sps:$4 sm:$0xff]  }
  0x17   :  { %v771_v9 = vld [vmem:[#allocation2 + $0xa4] ss:$20 sps:$4 sm:$0xff]   ;;  %v774_v11 = vld [vmem:[#allocation2 + $0xcc] ss:$20 sps:$4 sm:$0xff]   ;;  %v777_v13 = vld [vmem:[#allocation2 + $0xf4] ss:$20 sps:$4 sm:$0xff]  }
  0x18   :  { %v779_v14 = vld [vmem:[#allocation2 + $0xf0] ss:$20 sps:$4 sm:$0xff]   ;;  %v782_v16 = vld [vmem:[#allocation2 + $0x118] ss:$20 sps:$4 sm:$0xff]   ;;  %v872_v20 = vmov 0.0   ;;  %vm873_vm0 = vmmov 0  }
  0x19   :  { %137 = vmatpush1.bf16.msra.mxu0 %v764_v4  ;;  %v780_v15 = vld [vmem:[#allocation2 + $0x11c] ss:$20 sps:$4 sm:$0xff]   ;;  %v33_v17 = vld [vmem:[%s979_s0] sm:$0xff]  ;;  %718 = vmatprep.subr.bf16.mxu1 %v872_v20  ;;  %v786_v23 = vld [vmem:[#allocation2 + $0x58] ss:$20 sps:$4 sm:$0xff]   ;;  %vm188_vm1 = vcmask 130048  }
  0x1a   :  { %138 = vmatprep.subr.bf16.mxu0 %v765_v5  ;;  %v53_v19 = vpack.c.bf16 %v34_v18, %v33_v17  ;;  %734 = vmatprep.mubr.msk.bf16.mxu1 %vm873_vm0, %v872_v20  ;;  %v784_v21 = vld [vmem:[#allocation2 + $0x8] ss:$20 sps:$4 sm:$0xff]   ;;  %v785_v22 = vld [vmem:[#allocation2 + $0x30] ss:$20 sps:$4 sm:$0xff]   ;;  %v787_v24 = vld [vmem:[#allocation2 + $0x80] ss:$20 sps:$4 sm:$0xff]  }
  0x1b   :  { %719 = vmatpush3.bf16.msra.mxu1 %v784_v21  ;;  %v934_v30 = vld [vmem:[%s980_s1] sm:$0xff]   ;;  %v788_v31 = vld [vmem:[#allocation2 + $0xa8] ss:$20 sps:$4 sm:$0xff]   ;;  %v790_v33 = vld [vmem:[#allocation2 + $0xf8] ss:$20 sps:$4 sm:$0xff]  }
  0x1c   :  { %720 = vmatprep.subr.bf16.mxu1 %v872_v20  ;;  %v789_v32 = vld [vmem:[#allocation2 + $0xd0] ss:$20 sps:$4 sm:$0xff]   ;;  %v791_v34 = vld [vmem:[#allocation2 + $0x120] ss:$20 sps:$4 sm:$0xff]   ;;  %v797_v58 = vld [vmem:[#allocation2 + $0x38] ss:$20 sps:$4 sm:$0xff]  }
  0x1d   :  { %139 = vmatpush1.bf16.msra.mxu0 %v767_v6  ;;  %v664_v35 = vld [vmem:[%s982_s3] ss:$0 sm:$0xff]  ;;  %v667_v39 = vld [vmem:[%s982_s3 + $0x1] ss:$0 sm:$0xff]  ;;  %v794_v57 = vld [vmem:[#allocation2 + $0x10] ss:$20 sps:$4 sm:$0xff]  }
  0x1e   :  { %140 = vmatprep.subr.bf16.mxu0 %v768_v7  ;;  %v792_v56 = vld [vmem:[#allocation2 + $0xc] ss:$20 sps:$4 sm:$0xff]   ;;  %v795_v59 = vld [vmem:[#allocation2 + $0x34] ss:$20 sps:$4 sm:$0xff]   ;;  %v798_v61 = vld [vmem:[#allocation2 + $0x5c] ss:$20 sps:$4 sm:$0xff]  }
  0x1f   :  { %721 = vmatpush3.bf16.msra.mxu1 %v785_v22  ;;  %v800_v60 = vld [vmem:[#allocation2 + $0x60] ss:$20 sps:$4 sm:$0xff]   ;;  %v803_v62 = vld [vmem:[#allocation2 + $0x88] ss:$20 sps:$4 sm:$0xff]   ;;  %v801_v63 = vld [vmem:[#allocation2 + $0x84] ss:$20 sps:$4 sm:$0xff]  }
  0x20   :  { %722 = vmatprep.subr.bf16.mxu1 %v872_v20  ;;  %v806_v5 = vld [vmem:[#allocation2 + $0xb0] ss:$20 sps:$4 sm:$0xff]   ;;  %v804_v6 = vld [vmem:[#allocation2 + $0xac] ss:$20 sps:$4 sm:$0xff]  }
  0x21   :  { %141 = vmatpush1.bf16.msra.mxu0 %v770_v8  ;;  %v809_v7 = vld [vmem:[#allocation2 + $0xd8] ss:$20 sps:$4 sm:$0xff]   ;;  %v807_v8 = vld [vmem:[#allocation2 + $0xd4] ss:$20 sps:$4 sm:$0xff]  }
  0x22   :  { %142 = vmatprep.subr.bf16.mxu0 %v771_v9  ;;  %v812_v9 = vld [vmem:[#allocation2 + $0x100] ss:$20 sps:$4 sm:$0xff]  }
  0x23   :  { %723 = vmatpush3.bf16.msra.mxu1 %v786_v23 }
  0x24   :  { %724 = vmatprep.subr.bf16.mxu1 %v872_v20 }
  0x25   :  { %143 = vmatpush1.bf16.msra.mxu0 %v773_v10  ;;  %v810_v10 = vld [vmem:[#allocation2 + $0xfc] ss:$20 sps:$4 sm:$0xff]  }
  0x26   :  { %144 = vmatprep.subr.bf16.mxu0 %v774_v11  ;;  %v815_v11 = vld [vmem:[#allocation2 + $0x128] ss:$20 sps:$4 sm:$0xff]  }
  0x27   :  { %725 = vmatpush3.bf16.msra.mxu1 %v787_v24 }
  0x28   :  { %726 = vmatprep.subr.bf16.mxu1 %v872_v20 }
  0x29   :  { %145 = vmatpush1.bf16.msra.mxu0 %v776_v12  ;;  %v813_v12 = vld [vmem:[#allocation2 + $0x124] ss:$20 sps:$4 sm:$0xff]  }
  0x2a   :  { %146 = vmatprep.subr.bf16.mxu0 %v777_v13  ;;  %v676_v13 = vld [vmem:[%s982_s3 + $0x2] ss:$0 sm:$0xff] }
  0x2b   :  { %727 = vmatpush3.bf16.msra.mxu1 %v788_v31 }
  0x2c   :  { %728 = vmatprep.subr.bf16.mxu1 %v872_v20 }
  0x2d   :  { %147 = vmatpush1.bf16.msra.mxu0 %v779_v14 }
  0x2e   :  { %148 = vmatprep.subr.bf16.mxu0 %v780_v15 }
  0x2f   :  { %729 = vmatpush3.bf16.msra.mxu1 %v789_v32 }
  0x30   :  { %730 = vmatprep.subr.bf16.mxu1 %v872_v20 }
  0x31   :  { %149 = vmatpush1.bf16.msra.mxu0 %v782_v16 }
  0x32   :  { %712 = vmatprep.subr.bf16.mxu0 %v872_v20 }
  0x33   :  { %731 = vmatpush3.bf16.msra.mxu1 %v790_v33 }
  0x34   :  { %167 = vmatmul.mubr.bf16.vlgmr.msra.gmra.mrb[0].mxu0 %v53_v19  ;;  %732 = vmatprep.subr.bf16.mxu1 %v872_v20 }
  0x35   :  { %714 = vmatprep.mubr.msk.bf16.mxu0 %vm873_vm0, %v872_v20 }
  0x37   :  { %733 = vmatpush3.bf16.msra.mxu1 %v791_v34 }
  0x38   :  { %510 = vmatprep.subr.bf16.mxu1 %v794_v57 }
 0x107   :  { %v168_v25 = vpop.f32.mrb[0].mxu0 }
 0x108   :  { %v170_v26 = vpop.f32.mrb[1].mxu0 }
 0x109   :  { %v172_v27 = vpop.f32.mrb[2].mxu0  ;;  %v242_v44 = vadd.f32 %v667_v39, %v170_v26 }
 0x10a   :  { %v178_v28 = vpack.c.bf16 %v172_v27, %v168_v25  ;;  %v174_v29 = vpop.f32.mrb[3].mxu0 }
 0x10b   :  { %v243_v47 = vadd.f32 %v667_v39, %v174_v29 }
 0x10c   :  { %713 = vmatpush3.bf16.msra.mxu0 %v178_v28 }
 0x10d   :  { %738 = vmatprep.subr.bf16.mxu0 %v872_v20 }
 0x10f   :  { %715 = vmatmul.mubr.msk.bf16.vlgmr.msra.gmra.mrb[4].mxu0 %vm188_vm1, %v934_v30 }
 0x110   :  { %740 = vmatprep.mubr.msk.bf16.mxu0 %vm873_vm0, %v872_v20 }
 0x1e2   :  { %v226_v36 = vpop.f32.mrb[4].mxu0 }
 0x1e3   :  { %v227_v37 = vadd.f32 %v664_v35, %v226_v36  ;;  %v716_v38 = vpop.f32.mrb[5].mxu0 }
 0x1e4   :  { %v229_v40 = vpop.f32.mrb[6].mxu0 }
 0x1e5   :  { %v233_v41 = vmul.f32 0.1, %v227_v37  ;;  %v230_v42 = vadd.f32 %v664_v35, %v229_v40  ;;  %v717_v43 = vpop.f32.mrb[7].mxu0 }
 0x1e7   :  { %v235_v45 = vmax.f32 %v227_v37, %v233_v41  ;;  %v234_v46 = vmul.f32 0.1, %v230_v42  ;;  %v694_v37 = vld [vmem:[%s982_s3 + $0x3] ss:$0 sm:$0xff]  ;;  %v696_v41 = vld [vmem:[%s982_s3 + $0x4] ss:$0 sm:$0xff] }
 0x1e8   :  { %s874_s3 = smov [#allocation5]  }
 0x1e9   :  { %v244_v48 = vadd.f32 %v242_v44, %v235_v45  ;;  %v236_v49 = vmax.f32 %v230_v42, %v234_v46  ;;  %s636_s16 = sshll.u32 %s874_s3, 4  ;;  %s637_s16 = int_to_ptr.vmem [resolvable:$true] %s636_s16 }
 0x1ea   :  { %s842_s17 = scalar_lea.vmem %s637_s16, 256  ;;  %p847_p9 = scmp.lt.s32.totalorder %s637_s16, %s637_s16 }
 0x1eb   :  { %v246_v50 = vmul.f32 0.1, %v244_v48  ;;  %v245_v51 = vadd.f32 %v243_v47, %v236_v49  ;;  %p843_p8 = scmp.ne.s32.totalorder %s637_s16, %s842_s17  ;;  %p848_p10 = scmp.lt.s32.totalorder %s842_s17, %s842_s17 }
 0x1ed   :  { %v247_v52 = vmul.f32 0.1, %v245_v51  ;;  %v248_v53 = vmax.f32 %v244_v48, %v246_v50  ;;  %p849_p11 = por %p848_p10, %p847_p9 }
 0x1ef   :  { %v249_v54 = vmax.f32 %v245_v51, %v247_v52  ;;  %p850_p12 = pnand %p849_p11, %p843_p8 }
 0x1f1   :  { %v266_v55 = vpack.c.bf16 %v249_v54, %v248_v53 }
 0x1f3   :  { %735 = vmatmul.mubr.bf16.vlgmr.msra.gmra.mrb[0].mxu1 %v266_v55 }
 0x1f4   :  { %542 = vmatprep.mubr.bf16.mxu1 %v871_v0  ;;  %511 = vmatpush1.bf16.msra.mxu1 %v792_v56 }
 0x1f5   :  { %512 = vmatprep.subr.bf16.mxu1 %v797_v58 }
 0x1f8   :  { %513 = vmatpush1.bf16.msra.mxu1 %v795_v59 }
 0x1f9   :  { %514 = vmatprep.subr.bf16.mxu1 %v800_v60 }
 0x1fc   :  { %515 = vmatpush1.bf16.msra.mxu1 %v798_v61 }
 0x1fd   :  { %516 = vmatprep.subr.bf16.mxu1 %v803_v62 }
 0x200   :  { %517 = vmatpush1.bf16.msra.mxu1 %v801_v63 }
 0x201   :  { %518 = vmatprep.subr.bf16.mxu1 %v806_v5 }
 0x204   :  { %519 = vmatpush1.bf16.msra.mxu1 %v804_v6 }
 0x205   :  { %520 = vmatprep.subr.bf16.mxu1 %v809_v7 }
 0x208   :  { %521 = vmatpush1.bf16.msra.mxu1 %v807_v8 }
 0x209   :  { %522 = vmatprep.subr.bf16.mxu1 %v812_v9 }
 0x20c   :  { %523 = vmatpush1.bf16.msra.mxu1 %v810_v10 }
 0x20d   :  { %524 = vmatprep.subr.bf16.mxu1 %v815_v11 }
 0x210   :  { %525 = vmatpush1.bf16.msra.mxu1 %v813_v12 }
 0x2c6   :  { %v349_v1 = vpop.f32.mrb[0].mxu1 }
 0x2c7   :  { %v736_v2 = vpop.f32.mrb[1].mxu1 }
 0x2c8   :  { %v352_v3 = vpop.f32.mrb[2].mxu1 }
 0x2c9   :  { %v357_v0 = vpack.c.bf16 %v352_v3, %v349_v1  ;;  %v737_v4 = vpop.f32.mrb[3].mxu1 }
 0x2cb   :  { %739 = vmatpush3.bf16.msra.mxu0 %v357_v0 }
 0x2cc   :  { %744 = vmatprep.subr.bf16.mxu0 %v872_v20 }
 0x2ce   :  { %741 = vmatmul.mubr.msk.bf16.vlgmr.msra.gmra.mrb[8].mxu0 %vm188_vm1, %v934_v30 }
 0x2cf   :  { %746 = vmatprep.mubr.msk.bf16.mxu0 %vm873_vm0, %v872_v20 }
 0x3a1   :  { %v396_v14 = vpop.f32.mrb[8].mxu0 }
 0x3a2   :  { %v397_v15 = vadd.f32 %v676_v13, %v396_v14  ;;  %v742_v16 = vpop.f32.mrb[9].mxu0 }
 0x3a3   :  { %v399_v17 = vpop.f32.mrb[10].mxu0 }
 0x3a4   :  { %v403_v18 = vmul.f32 0.1, %v397_v15  ;;  %v400_v19 = vadd.f32 %v676_v13, %v399_v17  ;;  %v743_v20 = vpop.f32.mrb[11].mxu0 }
 0x3a6   :  { %v405_v21 = vmax.f32 %v397_v15, %v403_v18  ;;  %v404_v22 = vmul.f32 0.1, %v400_v19 }
 0x3a8   :  { %v407_v23 = vadd.f32 %v405_v21, %v248_v53  ;;  %v406_v24 = vmax.f32 %v400_v19, %v404_v22 }
 0x3aa   :  { %v409_v25 = vmul.f32 0.1, %v407_v23  ;;  %v408_v26 = vadd.f32 %v406_v24, %v249_v54 }
 0x3ac   :  { %v410_v27 = vmul.f32 0.1, %v408_v26  ;;  %v411_v28 = vmax.f32 %v407_v23, %v409_v25 }
 0x3ae   :  { %v412_v29 = vmax.f32 %v408_v26, %v410_v27 }
 0x3b0   :  { %v429_v31 = vpack.c.bf16 %v412_v29, %v411_v28 }
 0x3b2   :  { %543 = vmatmul.mubr.bf16.vlgmr.msra.gmra.mrb[4].mxu1 %v429_v31 }
 0x485   :  { %v544_v32 = vpop.f32.mrb[4].mxu1 }
 0x486   :  { %v546_v33 = vpop.f32.mrb[5].mxu1 }
 0x487   :  { %v548_v34 = vpop.f32.mrb[6].mxu1  ;;  %v609_v46 = vadd.f32 %v696_v41, %v546_v33 }
 0x488   :  { %v554_v35 = vpack.c.bf16 %v548_v34, %v544_v32  ;;  %v550_v36 = vpop.f32.mrb[7].mxu1 }
 0x489   :  { %v610_v49 = vadd.f32 %v696_v41, %v550_v36 }
 0x48a   :  { %745 = vmatpush3.bf16.msra.mxu0 %v554_v35 }
 0x48d   :  { %747 = vmatmul.mubr.msk.bf16.vlgmr.msra.gmra.mrb[12].mxu0 %vm188_vm1, %v934_v30 }
 0x560   :  { %v593_v38 = vpop.f32.mrb[12].mxu0 }
 0x561   :  { %v594_v39 = vadd.f32 %v694_v37, %v593_v38  ;;  %v748_v40 = vpop.f32.mrb[13].mxu0 }
 0x562   :  { %v596_v42 = vpop.f32.mrb[14].mxu0 }
 0x563   :  { %v600_v43 = vmul.f32 0.1, %v594_v39  ;;  %v597_v44 = vadd.f32 %v694_v37, %v596_v42  ;;  %v749_v45 = vpop.f32.mrb[15].mxu0 }
 0x565   :  { %v602_v47 = vmax.f32 %v594_v39, %v600_v43  ;;  %v601_v48 = vmul.f32 0.1, %v597_v44 }
 0x567   :  { %v603_v30 = vmax.f32 %v597_v44, %v601_v48  ;;  %v611_v50 = vadd.f32 %v609_v46, %v602_v47 }
 0x569   :  { %v612_v51 = vadd.f32 %v610_v49, %v603_v30  ;;  %v613_v52 = vmul.f32 0.1, %v611_v50 }
 0x56b   :  { %v615_v53 = vmax.f32 %v611_v50, %v613_v52  ;;  %v614_v54 = vmul.f32 0.1, %v612_v51 }
 0x56d   :  { %v617_v55 = vmul.f32 %v615_v53, %v615_v53  ;;  %v616_v56 = vmax.f32 %v612_v51, %v614_v54 }
 0x56f   :  { %619 = vadd.xlane.f32.xlu0 %v617_v55  ;;  %v618_v57 = vmul.f32 %v616_v56, %v616_v56 }
 0x573   :  { %621 = vadd.xlane.f32.xlu0 %v618_v57 }
 0x5fc   :  { %v620_v58 = vpop.xlane.xlu0 %619 }
 0x5fd   :  { %v623_v59 = vmax.f32 %v620_v58, 1e-24 }
 0x5ff   :  { %816 = vrsqrt.f32 %v623_v59 }
 0x600   :  { %v622_v60 = vpop.xlane.xlu0 %621 }
 0x601   :  { %v624_v61 = vmax.f32 %v622_v60, 1e-24 }
 0x603   :  { %818 = vrsqrt.f32 %v624_v61 }
 0x609   :  { %v817_v62 = vpop.eup %816 }
 0x60a   :  { %v627_v63 = vmul.f32 %v817_v62, %v615_v53 }
 0x60c   :  { %629 = vst [vmem:[#allocation5] sm:$0xff] %v627_v63 }
 0x60d   :  { %v819_v1 = vpop.eup %818 }
 0x60e   :  { %v628_v2 = vmul.f32 %v819_v1, %v616_v56 }
 0x610   :  { %630 = vst [vmem:[#allocation5 + $0x8] sm:$0xff] %v628_v2 }
 0x611   :  { %853 = shalt.err (!%p850_p12)
}
 0x612   :  { %s854_s20 = scalar_lea.hbm %s983_s4, 256 }
 0x613   :  { %p855_p13 = scmp.ne.s32.totalorder %s983_s4, %s854_s20  ;;  %p858_p0 = scmp.lt.u32.totalorder %s854_s20, %s983_s4 }
 0x615   :  { %p860_p1 = pnand %p858_p0, %p855_p13 }
 0x617   :  { %863 = shalt.err (!%p860_p1)
}
 0x618   :  { %s875_s25 = smov 128   ;;  %s876_s26 = smov 8  }
 0x619   :  { %642 = dma.vmem_to_hbm [thread:$0]  %s637_s16, 256, %s983_s4, [#allocation4], %s875_s25, %s875_s25, %s876_s26  }
 0x61a   :  { %866 = dma.done.wait [#allocation4], 256  }
 0x61b   :  { %867 = vsyncadd [#allocation4], 4294967040 }
 0x61c   :  { %646 = vsyncpa [#allocation3], 1 }
 0x61d   :  { %647 = vsyncpa [#allocation4], 1 }

</bundles_post_ra>
